<compile_context>
chip_gen: v6e
topology: v6e:2x2x1
jax: 0.10.0
libtpu: 0.0.40
codegen_flags: <defaults>
</compile_context>

<pallas_src>
import jax
import jax.numpy as jnp
from jax import lax
from jax.experimental import pallas as pl
from jax.experimental.pallas import tpu as pltpu


# ---------------------------------------------------------------------------
# Fused input-projection + serial recurrence kernel
# ---------------------------------------------------------------------------

def _fused_rnn_kernel(xe_ref, win_ref, whh_ref, o_ref, xp_ref, th_ref):
    """One grid step = a block of t_blk consecutive time steps.

    xe_ref  : (t_blk*B, E) bf16  embedded tokens for this block (time-major)
    win_ref : (E, H)       bf16  input->hidden weight (resident, const index)
    whh_ref : (H, H)       bf16  hidden->hidden weight (resident, const index)
    o_ref   : (t_blk*B, H) bf16  tanh(h) for this block (readout input layout)
    xp_ref  : (t_blk*B, H) f32   scratch: this block's input projection
    th_ref  : (B, H)       bf16  scratch: tanh(h) carry across grid blocks
    """
    B, _ = th_ref.shape
    t_blk = xe_ref.shape[0] // B

    # tanh carry starts at 0  =>  h_0 = 0 @ W_hh + x_0 = x_0, matching the
    # PyTorch s == 0 branch exactly (no extra branch on the serial path).
    @pl.when(pl.program_id(0) == 0)
    def _():
        th_ref[...] = jnp.zeros_like(th_ref)

    # Block-level input projection: one (t_blk*B, E) @ (E, H) MXU matmul,
    # off the serial critical path; result stays in VMEM (no HBM round trip).
    xp_ref[...] = jnp.dot(xe_ref[...], win_ref[...],
                          preferred_element_type=jnp.float32)

    w_hh = whh_ref[...]          # hoisted: loaded once per block, bf16 operand
    th = th_ref[...]             # carry lives in vregs within the block

    # Static unroll: static slice offsets, no per-step VMEM round trip of the
    # carry; tanh in f32 (v5e has no bf16 EUP), one bf16 cast per step reused
    # both as the next step's MXU LHS and as the stored output.
    for s in range(t_blk):
        h = jnp.dot(th, w_hh, preferred_element_type=jnp.float32) \
            + xp_ref[pl.ds(s * B, B), :]                    # (B, H) f32
        th = jnp.tanh(h).astype(jnp.bfloat16)
        o_ref[pl.ds(s * B, B), :] = th

    th_ref[...] = th             # single cross-block carry writeback


def _fused_recurrence(x_e_flat, w_in_bf16, w_hh_bf16, *, batch, t_blk=16):
    """x_e_flat [S*B, E] bf16 -> tanh(h) [S*B, H] bf16 (time-major rows)."""
    SB, E = x_e_flat.shape
    H = w_hh_bf16.shape[0]
    S = SB // batch
    t_blk = min(t_blk, S)
    assert S % t_blk == 0, "demo sequence length must be a multiple of t_blk"
    TB = t_blk * batch

    return pl.pallas_call(
        _fused_rnn_kernel,
        out_shape=jax.ShapeDtypeStruct((SB, H), jnp.bfloat16),
        grid_spec=pltpu.PrefetchScalarGridSpec(
            num_scalar_prefetch=0,
            grid=(S // t_blk,),
            in_specs=[pl.BlockSpec((TB, E), lambda t: (t, 0)),
                      pl.BlockSpec((E, H), lambda t: (0, 0)),
                      pl.BlockSpec((H, H), lambda t: (0, 0))],
            out_specs=pl.BlockSpec((TB, H), lambda t: (t, 0)),
            scratch_shapes=[pltpu.VMEM((TB, H), jnp.float32),
                            pltpu.VMEM((batch, H), jnp.bfloat16)],
        ),
        compiler_params=pltpu.CompilerParams(
            # recurrence along the sequence axis => must run sequentially
            dimension_semantics=("arbitrary",),
        ),
    )(x_e_flat, w_in_bf16, w_hh_bf16)


# ---------------------------------------------------------------------------
# Tiled readout matmul (+ bias); specialized when the K reduction fits one tile
# ---------------------------------------------------------------------------

def _matmul_direct_kernel(x_ref, w_ref, o_ref):
    o_ref[...] = jnp.dot(x_ref[...], w_ref[...],
                         preferred_element_type=jnp.float32).astype(o_ref.dtype)


def _matmul_bias_direct_kernel(x_ref, w_ref, b_ref, o_ref):
    o_ref[...] = (jnp.dot(x_ref[...], w_ref[...],
                          preferred_element_type=jnp.float32)
                  + b_ref[...]).astype(o_ref.dtype)


def _matmul_acc_kernel(x_ref, w_ref, o_ref, acc_ref):
    @pl.when(pl.program_id(2) == 0)
    def _():
        acc_ref[...] = jnp.zeros_like(acc_ref)

    acc_ref[...] += jnp.dot(x_ref[...], w_ref[...],
                            preferred_element_type=jnp.float32)

    @pl.when(pl.program_id(2) == pl.num_programs(2) - 1)
    def _():
        o_ref[...] = acc_ref[...].astype(o_ref.dtype)


def _matmul_bias_acc_kernel(x_ref, w_ref, b_ref, o_ref, acc_ref):
    @pl.when(pl.program_id(2) == 0)
    def _():
        acc_ref[...] = jnp.zeros_like(acc_ref)

    acc_ref[...] += jnp.dot(x_ref[...], w_ref[...],
                            preferred_element_type=jnp.float32)

    @pl.when(pl.program_id(2) == pl.num_programs(2) - 1)
    def _():
        o_ref[...] = (acc_ref[...] + b_ref[...]).astype(o_ref.dtype)


def _tiled_matmul(x, w, bias=None, *, tm=256, tn=256, tk=256,
                  out_dtype=jnp.float32):
    """[M, K] @ [K, N] (+ bias[N]) with parallel M/N tiles (megacore on v7x)."""
    M, K = x.shape
    K2, N = w.shape
    assert K == K2
    tm, tn, tk = min(tm, M), min(tn, N), min(tk, K)
    # TODO(synk): pad / mask for non-tile-divisible production shapes.
    assert M % tm == 0 and N % tn == 0 and K % tk == 0, "demo shapes must tile"

    have_bias = bias is not None
    if have_bias:
        bias2d = bias.reshape(1, N).astype(jnp.float32)

    if K == tk:
        # Single reduction step: skip the f32 acc scratch, write o_ref directly.
        in_specs = [pl.BlockSpec((tm, tk), lambda i, j: (i, 0)),
                    pl.BlockSpec((tk, tn), lambda i, j: (0, j))]
        args = [x, w]
        kernel = _matmul_direct_kernel
        if have_bias:
            in_specs.append(pl.BlockSpec((1, tn), lambda i, j: (0, j)))
            args.append(bias2d)
            kernel = _matmul_bias_direct_kernel
        return pl.pallas_call(
            kernel,
            out_shape=jax.ShapeDtypeStruct((M, N), out_dtype),
            grid_spec=pltpu.PrefetchScalarGridSpec(
                num_scalar_prefetch=0,
                grid=(M // tm, N // tn),
                in_specs=in_specs,
                out_specs=pl.BlockSpec((tm, tn), lambda i, j: (i, j)),
            ),
            compiler_params=pltpu.CompilerParams(
                dimension_semantics=("parallel", "parallel"),
            ),
        )(*args)

    # General K-tiled path with f32 accumulation.
    in_specs = [pl.BlockSpec((tm, tk), lambda i, j, k: (i, k)),
                pl.BlockSpec((tk, tn), lambda i, j, k: (k, j))]
    args = [x, w]
    kernel = _matmul_acc_kernel
    if have_bias:
        in_specs.append(pl.BlockSpec((1, tn), lambda i, j, k: (0, j)))
        args.append(bias2d)
        kernel = _matmul_bias_acc_kernel
    return pl.pallas_call(
        kernel,
        out_shape=jax.ShapeDtypeStruct((M, N), out_dtype),
        grid_spec=pltpu.PrefetchScalarGridSpec(
            num_scalar_prefetch=0,
            grid=(M // tm, N // tn, K // tk),
            in_specs=in_specs,
            out_specs=pl.BlockSpec((tm, tn), lambda i, j, k: (i, j)),
            scratch_shapes=[pltpu.VMEM((tm, tn), jnp.float32)],
        ),
        compiler_params=pltpu.CompilerParams(
            dimension_semantics=("parallel", "parallel", "arbitrary"),
        ),
    )(*args)


# ---------------------------------------------------------------------------
# PCRNN.predict
# ---------------------------------------------------------------------------

def pcrnn_predict(tokens, embedding, w_in, w_hh, w_out, b_out, *, t_blk=16):
    """PCRNN.predict: tokens [S, B] int32 -> logits [S*B, V]."""
    S, B = tokens.shape
    E = embedding.shape[1]

    # Embedding gather is glue (XLA gather), kept in bf16 to halve HBM traffic.
    # TODO(synk): fuse the gather into the recurrence kernel (scalar-prefetched
    # token ids + VMEM-resident table) to remove the x_e HBM materialization.
    x_e = jnp.take(embedding.astype(jnp.bfloat16), tokens, axis=0)    # [S,B,E]
    x_e = x_e.reshape(S * B, E)                                       # time-major rows

    # 1+2) fused input projection + serial recurrence (one kernel, one HBM pass).
    # TODO(synk): on v7x with B >= 16, add a "parallel" batch-split grid axis so
    # the second TensorCore shares the recurrence (independent per batch row).
    tanh_h = _fused_recurrence(x_e,
                               w_in.astype(jnp.bfloat16),
                               w_hh.astype(jnp.bfloat16),
                               batch=B, t_blk=t_blk)                  # [S*B,H] bf16

    # 3) batched, lane-dense readout: [S*B, H] @ [H, V] + bias, V tiled
    #    as a parallel grid axis (keeps VMEM bounded for big vocabs).
    logits = _tiled_matmul(tanh_h, w_out.astype(jnp.bfloat16),
                           bias=b_out, out_dtype=jnp.float32)         # [S*B, V]
    return logits


# ---------------------------------------------------------------------------
# Pure-JAX reference (replicates the PyTorch forward in f32)
# ---------------------------------------------------------------------------

def _reference_predict(tokens, embedding, w_in, w_hh, w_out, b_out):
    x_e = jnp.take(embedding, tokens, axis=0)            # [S, B, E]
    x = jnp.einsum("sbe,eh->sbh", x_e, w_in)             # [S, B, H]

    # carrying tanh(h) with a zero init reproduces the s == 0 branch exactly:
    # h_0 = 0 @ W_hh + x_0 = x_0.
    def step(th, x_s):
        h = jnp.dot(th, w_hh) + x_s
        t = jnp.tanh(h)
        return t, t

    _, out = jax.lax.scan(step, jnp.zeros_like(x[0]), x)  # [S, B, H] = tanh(h)
    out = out.reshape(-1, out.shape[-1])
    return jnp.dot(out, w_out) + b_out                    # [S*B, V]


if __name__ == "__main__":
    # Small, hardware-aligned configuration consistent with the module defaults
    # (hiddenSize=128; seq-first [S, B] inputs; lane-dense E/H/V multiples of 128).
    S, B = 16, 8             # sequence length, batch size
    V, E, H = 256, 128, 128  # vocabulary, embedding size, hidden size

    key = jax.random.PRNGKey(0)
    k_tok, k_emb, k_in, k_hh, k_out, k_b = jax.random.split(key, 6)

    tokens = jax.random.randint(k_tok, (S, B), 0, V, dtype=jnp.int32)

    # nn.Embedding default init: N(0, 1)
    embedding = jax.random.normal(k_emb, (V, E), dtype=jnp.float32)
    # nn.Linear default init: U(-1/sqrt(fan_in), 1/sqrt(fan_in));
    # weights stored here already transposed to [in, out].
    w_in = jax.random.uniform(k_in, (E, H), dtype=jnp.float32,
                              minval=-1.0 / jnp.sqrt(E), maxval=1.0 / jnp.sqrt(E))
    w_hh = jax.random.uniform(k_hh, (H, H), dtype=jnp.float32,
                              minval=-1.0 / jnp.sqrt(H), maxval=1.0 / jnp.sqrt(H))
    w_out = jax.random.uniform(k_out, (H, V), dtype=jnp.float32,
                               minval=-1.0 / jnp.sqrt(H), maxval=1.0 / jnp.sqrt(H))
    b_out = jax.random.uniform(k_b, (V,), dtype=jnp.float32,
                               minval=-1.0 / jnp.sqrt(H), maxval=1.0 / jnp.sqrt(H))

    logits = pcrnn_predict(tokens, embedding, w_in, w_hh, w_out, b_out)
    logits = jax.block_until_ready(logits)

    # Reference run in f32 with the same bf16-rounded parameters the kernels
    # consume, isolating kernel correctness from the intended mixed-precision
    # (bf16 MXU inputs, f32 accumulation) cast.
    rnd = lambda a: a.astype(jnp.bfloat16).astype(jnp.float32)
    ref = _reference_predict(tokens, rnd(embedding), rnd(w_in), rnd(w_hh),
                             rnd(w_out), b_out)

    assert logits.shape == (S * B, V)
    assert jnp.allclose(logits, ref, atol=5e-2, rtol=5e-2), "mismatch vs reference"

    print("KERNEL_OK")
</pallas_src>

<mosaic_0001>
module attributes {stable_mosaic.version = 11 : i64} {
  func.func @_fused_rnn_kernel(%arg0: i32, %arg1: memref<128x128xbf16, #tpu.memory_space<vmem>>, %arg2: memref<128x128xbf16, #tpu.memory_space<vmem>>, %arg3: memref<128x128xbf16, #tpu.memory_space<vmem>>, %arg4: memref<128x128xbf16, #tpu.memory_space<vmem>>, %arg5: memref<128x128xf32, #tpu.memory_space<vmem>>, %arg6: memref<8x128xbf16, #tpu.memory_space<vmem>>) attributes {dimension_semantics = [#tpu.dimension_semantics<arbitrary>], iteration_bounds = array<i64: 1>, scalar_prefetch = 0 : i64, scratch_operands = 2 : i64, tpu.core_type = #tpu.core_type<tc>, window_params = [{transform_indices = @transform_0, window_bounds = array<i64: 128, 128>}, {pipeline_mode = #tpu.pipeline_mode<synchronous>, transform_indices = @transform_1, window_bounds = array<i64: 128, 128>}, {pipeline_mode = #tpu.pipeline_mode<synchronous>, transform_indices = @transform_2, window_bounds = array<i64: 128, 128>}, {transform_indices = @transform_3, window_bounds = array<i64: 128, 128>}]} {
    %c0_i32 = arith.constant 0 : i32
    %0 = arith.cmpi eq, %arg0, %c0_i32 : i32
    %1 = arith.extui %0 : i1 to i32
    %c0_i32_0 = arith.constant 0 : i32
    %2 = arith.cmpi ne, %1, %c0_i32_0 : i32
    scf.if %2 {
      %cst_77 = arith.constant 0.000000e+00 : bf16
      %106 = vector.broadcast %cst_77 : bf16 to vector<8x128xbf16>
      %c0_78 = arith.constant 0 : index
      %c0_79 = arith.constant 0 : index
      %107 = vector.load %arg6[%c0_78, %c0_79] : memref<8x128xbf16, #tpu.memory_space<vmem>>, vector<8x128xbf16>
      tpu.vector_store %arg6[%c0_78, %c0_79], %106 {strides = array<i32>} : memref<8x128xbf16, #tpu.memory_space<vmem>>, vector<8x128xbf16>,
    } else {
    }
    %c0 = arith.constant 0 : index
    %c0_1 = arith.constant 0 : index
    %3 = vector.load %arg1[%c0, %c0_1] : memref<128x128xbf16, #tpu.memory_space<vmem>>, vector<128x128xbf16>
    %c0_2 = arith.constant 0 : index
    %c0_3 = arith.constant 0 : index
    %4 = vector.load %arg2[%c0_2, %c0_3] : memref<128x128xbf16, #tpu.memory_space<vmem>>, vector<128x128xbf16>
    %cst = arith.constant dense<0.000000e+00> : vector<128x128xf32>
    %5 = tpu.matmul %3, %4, %cst {dimension_numbers = #tpu.dot_dimension_numbers<[1], [0], [0], [1], [0, 0, 1, 1], [], []>} : vector<128x128xbf16>, vector<128x128xbf16>, vector<128x128xf32> -> vector<128x128xf32>
    %c0_4 = arith.constant 0 : index
    %c0_5 = arith.constant 0 : index
    %6 = vector.load %arg5[%c0_4, %c0_5] : memref<128x128xf32, #tpu.memory_space<vmem>>, vector<128x128xf32>
    tpu.vector_store %arg5[%c0_4, %c0_5], %5 {strides = array<i32>} : memref<128x128xf32, #tpu.memory_space<vmem>>, vector<128x128xf32>,
    %c0_6 = arith.constant 0 : index
    %c0_7 = arith.constant 0 : index
    %7 = vector.load %arg3[%c0_6, %c0_7] : memref<128x128xbf16, #tpu.memory_space<vmem>>, vector<128x128xbf16>
    %c0_8 = arith.constant 0 : index
    %c0_9 = arith.constant 0 : index
    %8 = vector.load %arg6[%c0_8, %c0_9] : memref<8x128xbf16, #tpu.memory_space<vmem>>, vector<8x128xbf16>
    %cst_10 = arith.constant dense<0.000000e+00> : vector<8x128xf32>
    %9 = tpu.matmul %8, %7, %cst_10 {dimension_numbers = #tpu.dot_dimension_numbers<[1], [0], [0], [1], [0, 0, 1, 1], [], []>} : vector<8x128xbf16>, vector<128x128xbf16>, vector<8x128xf32> -> vector<8x128xf32>
    %c0_11 = arith.constant 0 : index
    %c0_12 = arith.constant 0 : index
    %10 = vector.load %arg5[%c0_11, %c0_12] : memref<128x128xf32, #tpu.memory_space<vmem>>, vector<8x128xf32>
    %11 = arith.addf %9, %10 : vector<8x128xf32>
    %12 = math.tanh %11 : vector<8x128xf32>
    %13 = arith.truncf %12 : vector<8x128xf32> to vector<8x128xbf16>
    %c0_13 = arith.constant 0 : index
    %c0_14 = arith.constant 0 : index
    %14 = vector.load %arg4[%c0_13, %c0_14] : memref<128x128xbf16, #tpu.memory_space<vmem>>, vector<8x128xbf16>
    tpu.vector_store %arg4[%c0_13, %c0_14], %13 {strides = array<i32>} : memref<128x128xbf16, #tpu.memory_space<vmem>>, vector<8x128xbf16>,
    %cst_15 = arith.constant dense<0.000000e+00> : vector<8x128xf32>
    %15 = tpu.matmul %13, %7, %cst_15 {dimension_numbers = #tpu.dot_dimension_numbers<[1], [0], [0], [1], [0, 0, 1, 1], [], []>} : vector<8x128xbf16>, vector<128x128xbf16>, vector<8x128xf32> -> vector<8x128xf32>
    %c8 = arith.constant 8 : index
    %c0_16 = arith.constant 0 : index
    %16 = vector.load %arg5[%c8, %c0_16] : memref<128x128xf32, #tpu.memory_space<vmem>>, vector<8x128xf32>
    %17 = arith.addf %15, %16 : vector<8x128xf32>
    %18 = math.tanh %17 : vector<8x128xf32>
    %19 = arith.truncf %18 : vector<8x128xf32> to vector<8x128xbf16>
    %c8_17 = arith.constant 8 : index
    %c0_18 = arith.constant 0 : index
    %20 = vector.load %arg4[%c8_17, %c0_18] : memref<128x128xbf16, #tpu.memory_space<vmem>>, vector<8x128xbf16>
    tpu.vector_store %arg4[%c8_17, %c0_18], %19 {strides = array<i32>} : memref<128x128xbf16, #tpu.memory_space<vmem>>, vector<8x128xbf16>,
    %cst_19 = arith.constant dense<0.000000e+00> : vector<8x128xf32>
    %21 = tpu.matmul %19, %7, %cst_19 {dimension_numbers = #tpu.dot_dimension_numbers<[1], [0], [0], [1], [0, 0, 1, 1], [], []>} : vector<8x128xbf16>, vector<128x128xbf16>, vector<8x128xf32> -> vector<8x128xf32>
    %c16 = arith.constant 16 : index
    %c0_20 = arith.constant 0 : index
    %22 = vector.load %arg5[%c16, %c0_20] : memref<128x128xf32, #tpu.memory_space<vmem>>, vector<8x128xf32>
    %23 = arith.addf %21, %22 : vector<8x128xf32>
    %24 = math.tanh %23 : vector<8x128xf32>
    %25 = arith.truncf %24 : vector<8x128xf32> to vector<8x128xbf16>
    %c16_21 = arith.constant 16 : index
    %c0_22 = arith.constant 0 : index
    %26 = vector.load %arg4[%c16_21, %c0_22] : memref<128x128xbf16, #tpu.memory_space<vmem>>, vector<8x128xbf16>
    tpu.vector_store %arg4[%c16_21, %c0_22], %25 {strides = array<i32>} : memref<128x128xbf16, #tpu.memory_space<vmem>>, vector<8x128xbf16>,
    %cst_23 = arith.constant dense<0.000000e+00> : vector<8x128xf32>
    %27 = tpu.matmul %25, %7, %cst_23 {dimension_numbers = #tpu.dot_dimension_numbers<[1], [0], [0], [1], [0, 0, 1, 1], [], []>} : vector<8x128xbf16>, vector<128x128xbf16>, vector<8x128xf32> -> vector<8x128xf32>
    %c24 = arith.constant 24 : index
    %c0_24 = arith.constant 0 : index
    %28 = vector.load %arg5[%c24, %c0_24] : memref<128x128xf32, #tpu.memory_space<vmem>>, vector<8x128xf32>
    %29 = arith.addf %27, %28 : vector<8x128xf32>
    %30 = math.tanh %29 : vector<8x128xf32>
    %31 = arith.truncf %30 : vector<8x128xf32> to vector<8x128xbf16>
    %c24_25 = arith.constant 24 : index
    %c0_26 = arith.constant 0 : index
    %32 = vector.load %arg4[%c24_25, %c0_26] : memref<128x128xbf16, #tpu.memory_space<vmem>>, vector<8x128xbf16>
    tpu.vector_store %arg4[%c24_25, %c0_26], %31 {strides = array<i32>} : memref<128x128xbf16, #tpu.memory_space<vmem>>, vector<8x128xbf16>,
    %cst_27 = arith.constant dense<0.000000e+00> : vector<8x128xf32>
    %33 = tpu.matmul %31, %7, %cst_27 {dimension_numbers = #tpu.dot_dimension_numbers<[1], [0], [0], [1], [0, 0, 1, 1], [], []>} : vector<8x128xbf16>, vector<128x128xbf16>, vector<8x128xf32> -> vector<8x128xf32>
    %c32 = arith.constant 32 : index
    %c0_28 = arith.constant 0 : index
    %34 = vector.load %arg5[%c32, %c0_28] : memref<128x128xf32, #tpu.memory_space<vmem>>, vector<8x128xf32>
    %35 = arith.addf %33, %34 : vector<8x128xf32>
    %36 = math.tanh %35 : vector<8x128xf32>
    %37 = arith.truncf %36 : vector<8x128xf32> to vector<8x128xbf16>
    %c32_29 = arith.constant 32 : index
    %c0_30 = arith.constant 0 : index
    %38 = vector.load %arg4[%c32_29, %c0_30] : memref<128x128xbf16, #tpu.memory_space<vmem>>, vector<8x128xbf16>
    tpu.vector_store %arg4[%c32_29, %c0_30], %37 {strides = array<i32>} : memref<128x128xbf16, #tpu.memory_space<vmem>>, vector<8x128xbf16>,
    %cst_31 = arith.constant dense<0.000000e+00> : vector<8x128xf32>
    %39 = tpu.matmul %37, %7, %cst_31 {dimension_numbers = #tpu.dot_dimension_numbers<[1], [0], [0], [1], [0, 0, 1, 1], [], []>} : vector<8x128xbf16>, vector<128x128xbf16>, vector<8x128xf32> -> vector<8x128xf32>
    %c40 = arith.constant 40 : index
    %c0_32 = arith.constant 0 : index
    %40 = vector.load %arg5[%c40, %c0_32] : memref<128x128xf32, #tpu.memory_space<vmem>>, vector<8x128xf32>
    %41 = arith.addf %39, %40 : vector<8x128xf32>
    %42 = math.tanh %41 : vector<8x128xf32>
    %43 = arith.truncf %42 : vector<8x128xf32> to vector<8x128xbf16>
    %c40_33 = arith.constant 40 : index
    %c0_34 = arith.constant 0 : index
    %44 = vector.load %arg4[%c40_33, %c0_34] : memref<128x128xbf16, #tpu.memory_space<vmem>>, vector<8x128xbf16>
    tpu.vector_store %arg4[%c40_33, %c0_34], %43 {strides = array<i32>} : memref<128x128xbf16, #tpu.memory_space<vmem>>, vector<8x128xbf16>,
    %cst_35 = arith.constant dense<0.000000e+00> : vector<8x128xf32>
    %45 = tpu.matmul %43, %7, %cst_35 {dimension_numbers = #tpu.dot_dimension_numbers<[1], [0], [0], [1], [0, 0, 1, 1], [], []>} : vector<8x128xbf16>, vector<128x128xbf16>, vector<8x128xf32> -> vector<8x128xf32>
    %c48 = arith.constant 48 : index
    %c0_36 = arith.constant 0 : index
    %46 = vector.load %arg5[%c48, %c0_36] : memref<128x128xf32, #tpu.memory_space<vmem>>, vector<8x128xf32>
    %47 = arith.addf %45, %46 : vector<8x128xf32>
    %48 = math.tanh %47 : vector<8x128xf32>
    %49 = arith.truncf %48 : vector<8x128xf32> to vector<8x128xbf16>
    %c48_37 = arith.constant 48 : index
    %c0_38 = arith.constant 0 : index
    %50 = vector.load %arg4[%c48_37, %c0_38] : memref<128x128xbf16, #tpu.memory_space<vmem>>, vector<8x128xbf16>
    tpu.vector_store %arg4[%c48_37, %c0_38], %49 {strides = array<i32>} : memref<128x128xbf16, #tpu.memory_space<vmem>>, vector<8x128xbf16>,
    %cst_39 = arith.constant dense<0.000000e+00> : vector<8x128xf32>
    %51 = tpu.matmul %49, %7, %cst_39 {dimension_numbers = #tpu.dot_dimension_numbers<[1], [0], [0], [1], [0, 0, 1, 1], [], []>} : vector<8x128xbf16>, vector<128x128xbf16>, vector<8x128xf32> -> vector<8x128xf32>
    %c56 = arith.constant 56 : index
    %c0_40 = arith.constant 0 : index
    %52 = vector.load %arg5[%c56, %c0_40] : memref<128x128xf32, #tpu.memory_space<vmem>>, vector<8x128xf32>
    %53 = arith.addf %51, %52 : vector<8x128xf32>
    %54 = math.tanh %53 : vector<8x128xf32>
    %55 = arith.truncf %54 : vector<8x128xf32> to vector<8x128xbf16>
    %c56_41 = arith.constant 56 : index
    %c0_42 = arith.constant 0 : index
    %56 = vector.load %arg4[%c56_41, %c0_42] : memref<128x128xbf16, #tpu.memory_space<vmem>>, vector<8x128xbf16>
    tpu.vector_store %arg4[%c56_41, %c0_42], %55 {strides = array<i32>} : memref<128x128xbf16, #tpu.memory_space<vmem>>, vector<8x128xbf16>,
    %cst_43 = arith.constant dense<0.000000e+00> : vector<8x128xf32>
    %57 = tpu.matmul %55, %7, %cst_43 {dimension_numbers = #tpu.dot_dimension_numbers<[1], [0], [0], [1], [0, 0, 1, 1], [], []>} : vector<8x128xbf16>, vector<128x128xbf16>, vector<8x128xf32> -> vector<8x128xf32>
    %c64 = arith.constant 64 : index
    %c0_44 = arith.constant 0 : index
    %58 = vector.load %arg5[%c64, %c0_44] : memref<128x128xf32, #tpu.memory_space<vmem>>, vector<8x128xf32>
    %59 = arith.addf %57, %58 : vector<8x128xf32>
    %60 = math.tanh %59 : vector<8x128xf32>
    %61 = arith.truncf %60 : vector<8x128xf32> to vector<8x128xbf16>
    %c64_45 = arith.constant 64 : index
    %c0_46 = arith.constant 0 : index
    %62 = vector.load %arg4[%c64_45, %c0_46] : memref<128x128xbf16, #tpu.memory_space<vmem>>, vector<8x128xbf16>
    tpu.vector_store %arg4[%c64_45, %c0_46], %61 {strides = array<i32>} : memref<128x128xbf16, #tpu.memory_space<vmem>>, vector<8x128xbf16>,
    %cst_47 = arith.constant dense<0.000000e+00> : vector<8x128xf32>
    %63 = tpu.matmul %61, %7, %cst_47 {dimension_numbers = #tpu.dot_dimension_numbers<[1], [0], [0], [1], [0, 0, 1, 1], [], []>} : vector<8x128xbf16>, vector<128x128xbf16>, vector<8x128xf32> -> vector<8x128xf32>
    %c72 = arith.constant 72 : index
    %c0_48 = arith.constant 0 : index
    %64 = vector.load %arg5[%c72, %c0_48] : memref<128x128xf32, #tpu.memory_space<vmem>>, vector<8x128xf32>
    %65 = arith.addf %63, %64 : vector<8x128xf32>
    %66 = math.tanh %65 : vector<8x128xf32>
    %67 = arith.truncf %66 : vector<8x128xf32> to vector<8x128xbf16>
    %c72_49 = arith.constant 72 : index
    %c0_50 = arith.constant 0 : index
    %68 = vector.load %arg4[%c72_49, %c0_50] : memref<128x128xbf16, #tpu.memory_space<vmem>>, vector<8x128xbf16>
    tpu.vector_store %arg4[%c72_49, %c0_50], %67 {strides = array<i32>} : memref<128x128xbf16, #tpu.memory_space<vmem>>, vector<8x128xbf16>,
    %cst_51 = arith.constant dense<0.000000e+00> : vector<8x128xf32>
    %69 = tpu.matmul %67, %7, %cst_51 {dimension_numbers = #tpu.dot_dimension_numbers<[1], [0], [0], [1], [0, 0, 1, 1], [], []>} : vector<8x128xbf16>, vector<128x128xbf16>, vector<8x128xf32> -> vector<8x128xf32>
    %c80 = arith.constant 80 : index
    %c0_52 = arith.constant 0 : index
    %70 = vector.load %arg5[%c80, %c0_52] : memref<128x128xf32, #tpu.memory_space<vmem>>, vector<8x128xf32>
    %71 = arith.addf %69, %70 : vector<8x128xf32>
    %72 = math.tanh %71 : vector<8x128xf32>
    %73 = arith.truncf %72 : vector<8x128xf32> to vector<8x128xbf16>
    %c80_53 = arith.constant 80 : index
    %c0_54 = arith.constant 0 : index
    %74 = vector.load %arg4[%c80_53, %c0_54] : memref<128x128xbf16, #tpu.memory_space<vmem>>, vector<8x128xbf16>
    tpu.vector_store %arg4[%c80_53, %c0_54], %73 {strides = array<i32>} : memref<128x128xbf16, #tpu.memory_space<vmem>>, vector<8x128xbf16>,
    %cst_55 = arith.constant dense<0.000000e+00> : vector<8x128xf32>
    %75 = tpu.matmul %73, %7, %cst_55 {dimension_numbers = #tpu.dot_dimension_numbers<[1], [0], [0], [1], [0, 0, 1, 1], [], []>} : vector<8x128xbf16>, vector<128x128xbf16>, vector<8x128xf32> -> vector<8x128xf32>
    %c88 = arith.constant 88 : index
    %c0_56 = arith.constant 0 : index
    %76 = vector.load %arg5[%c88, %c0_56] : memref<128x128xf32, #tpu.memory_space<vmem>>, vector<8x128xf32>
    %77 = arith.addf %75, %76 : vector<8x128xf32>
    %78 = math.tanh %77 : vector<8x128xf32>
    %79 = arith.truncf %78 : vector<8x128xf32> to vector<8x128xbf16>
    %c88_57 = arith.constant 88 : index
    %c0_58 = arith.constant 0 : index
    %80 = vector.load %arg4[%c88_57, %c0_58] : memref<128x128xbf16, #tpu.memory_space<vmem>>, vector<8x128xbf16>
    tpu.vector_store %arg4[%c88_57, %c0_58], %79 {strides = array<i32>} : memref<128x128xbf16, #tpu.memory_space<vmem>>, vector<8x128xbf16>,
    %cst_59 = arith.constant dense<0.000000e+00> : vector<8x128xf32>
    %81 = tpu.matmul %79, %7, %cst_59 {dimension_numbers = #tpu.dot_dimension_numbers<[1], [0], [0], [1], [0, 0, 1, 1], [], []>} : vector<8x128xbf16>, vector<128x128xbf16>, vector<8x128xf32> -> vector<8x128xf32>
    %c96 = arith.constant 96 : index
    %c0_60 = arith.constant 0 : index
    %82 = vector.load %arg5[%c96, %c0_60] : memref<128x128xf32, #tpu.memory_space<vmem>>, vector<8x128xf32>
    %83 = arith.addf %81, %82 : vector<8x128xf32>
    %84 = math.tanh %83 : vector<8x128xf32>
    %85 = arith.truncf %84 : vector<8x128xf32> to vector<8x128xbf16>
    %c96_61 = arith.constant 96 : index
    %c0_62 = arith.constant 0 : index
    %86 = vector.load %arg4[%c96_61, %c0_62] : memref<128x128xbf16, #tpu.memory_space<vmem>>, vector<8x128xbf16>
    tpu.vector_store %arg4[%c96_61, %c0_62], %85 {strides = array<i32>} : memref<128x128xbf16, #tpu.memory_space<vmem>>, vector<8x128xbf16>,
    %cst_63 = arith.constant dense<0.000000e+00> : vector<8x128xf32>
    %87 = tpu.matmul %85, %7, %cst_63 {dimension_numbers = #tpu.dot_dimension_numbers<[1], [0], [0], [1], [0, 0, 1, 1], [], []>} : vector<8x128xbf16>, vector<128x128xbf16>, vector<8x128xf32> -> vector<8x128xf32>
    %c104 = arith.constant 104 : index
    %c0_64 = arith.constant 0 : index
    %88 = vector.load %arg5[%c104, %c0_64] : memref<128x128xf32, #tpu.memory_space<vmem>>, vector<8x128xf32>
    %89 = arith.addf %87, %88 : vector<8x128xf32>
    %90 = math.tanh %89 : vector<8x128xf32>
    %91 = arith.truncf %90 : vector<8x128xf32> to vector<8x128xbf16>
    %c104_65 = arith.constant 104 : index
    %c0_66 = arith.constant 0 : index
    %92 = vector.load %arg4[%c104_65, %c0_66] : memref<128x128xbf16, #tpu.memory_space<vmem>>, vector<8x128xbf16>
    tpu.vector_store %arg4[%c104_65, %c0_66], %91 {strides = array<i32>} : memref<128x128xbf16, #tpu.memory_space<vmem>>, vector<8x128xbf16>,
    %cst_67 = arith.constant dense<0.000000e+00> : vector<8x128xf32>
    %93 = tpu.matmul %91, %7, %cst_67 {dimension_numbers = #tpu.dot_dimension_numbers<[1], [0], [0], [1], [0, 0, 1, 1], [], []>} : vector<8x128xbf16>, vector<128x128xbf16>, vector<8x128xf32> -> vector<8x128xf32>
    %c112 = arith.constant 112 : index
    %c0_68 = arith.constant 0 : index
    %94 = vector.load %arg5[%c112, %c0_68] : memref<128x128xf32, #tpu.memory_space<vmem>>, vector<8x128xf32>
    %95 = arith.addf %93, %94 : vector<8x128xf32>
    %96 = math.tanh %95 : vector<8x128xf32>
    %97 = arith.truncf %96 : vector<8x128xf32> to vector<8x128xbf16>
    %c112_69 = arith.constant 112 : index
    %c0_70 = arith.constant 0 : index
    %98 = vector.load %arg4[%c112_69, %c0_70] : memref<128x128xbf16, #tpu.memory_space<vmem>>, vector<8x128xbf16>
    tpu.vector_store %arg4[%c112_69, %c0_70], %97 {strides = array<i32>} : memref<128x128xbf16, #tpu.memory_space<vmem>>, vector<8x128xbf16>,
    %cst_71 = arith.constant dense<0.000000e+00> : vector<8x128xf32>
    %99 = tpu.matmul %97, %7, %cst_71 {dimension_numbers = #tpu.dot_dimension_numbers<[1], [0], [0], [1], [0, 0, 1, 1], [], []>} : vector<8x128xbf16>, vector<128x128xbf16>, vector<8x128xf32> -> vector<8x128xf32>
    %c120 = arith.constant 120 : index
    %c0_72 = arith.constant 0 : index
    %100 = vector.load %arg5[%c120, %c0_72] : memref<128x128xf32, #tpu.memory_space<vmem>>, vector<8x128xf32>
    %101 = arith.addf %99, %100 : vector<8x128xf32>
    %102 = math.tanh %101 : vector<8x128xf32>
    %103 = arith.truncf %102 : vector<8x128xf32> to vector<8x128xbf16>
    %c120_73 = arith.constant 120 : index
    %c0_74 = arith.constant 0 : index
    %104 = vector.load %arg4[%c120_73, %c0_74] : memref<128x128xbf16, #tpu.memory_space<vmem>>, vector<8x128xbf16>
    tpu.vector_store %arg4[%c120_73, %c0_74], %103 {strides = array<i32>} : memref<128x128xbf16, #tpu.memory_space<vmem>>, vector<8x128xbf16>,
    %c0_75 = arith.constant 0 : index
    %c0_76 = arith.constant 0 : index
    %105 = vector.load %arg6[%c0_75, %c0_76] : memref<8x128xbf16, #tpu.memory_space<vmem>>, vector<8x128xbf16>
    tpu.vector_store %arg6[%c0_75, %c0_76], %103 {strides = array<i32>} : memref<8x128xbf16, #tpu.memory_space<vmem>>, vector<8x128xbf16>,
    return
  }
  func.func @transform_0(%arg0: i32) -> (i32, i32) {
    %c0_i32 = arith.constant 0 : i32
    %c0_i32_0 = arith.constant 0 : i32
    return %arg0, %c0_i32 : i32, i32
  }
  func.func @transform_1(%arg0: i32) -> (i32, i32) {
    %c0_i32 = arith.constant 0 : i32
    %c0_i32_0 = arith.constant 0 : i32
    %c0_i32_1 = arith.constant 0 : i32
    return %c0_i32, %c0_i32_0 : i32, i32
  }
  func.func @transform_2(%arg0: i32) -> (i32, i32) {
    %c0_i32 = arith.constant 0 : i32
    %c0_i32_0 = arith.constant 0 : i32
    %c0_i32_1 = arith.constant 0 : i32
    return %c0_i32, %c0_i32_0 : i32, i32
  }
  func.func @transform_3(%arg0: i32) -> (i32, i32) {
    %c0_i32 = arith.constant 0 : i32
    %c0_i32_0 = arith.constant 0 : i32
    return %arg0, %c0_i32 : i32, i32
  }
}

</mosaic_0001>

<bundles_post_ra>
// kernel: tpu_custom_call.1
= control target key start
LH: loop header
LB: loop body
LE: loop exit
PB: predicated region body
PF: predicated region fallthrough
CT: control target
= control target key end

     0   :  { %8 = vsyncpa [#allocation5], 0  ;;  %s2177_s0 = inlined_call_operand.hbm [shape: bf16[128,128], index: 0, kind: input, shape index: {}]   ;;  %s2178_s1 = inlined_call_operand.hbm [shape: bf16[128,128], index: 1, kind: input, shape index: {}]   ;;  %s2179_s2 = inlined_call_operand.hbm [shape: bf16[128,128], index: 2, kind: input, shape index: {}]   ;;  %s2180_s3 = inlined_call_operand.hbm [shape: bf16[128,128], index: 3, kind: output, shape index: {}]  }
   0x1   :  { %9 = vsyncpa [#allocation8], 0 }
   0x2   :  { %10 = vsyncpa [#allocation6], 0  ;;  %s1778_s12 = smov [#allocation7]   ;;  %s1779_s14 = smov [#allocation4]  }
   0x3   :  { %s28_s13 = sshll.u32 %s1778_s12, 4  ;;  %s16_s15 = sshll.u32 %s1779_s14, 4  ;;  %s29_s13 = int_to_ptr.vmem [resolvable:$true] %s28_s13  ;;  %s17_s15 = int_to_ptr.vmem [resolvable:$true] %s16_s15 }
   0x4   :  { %s1700_s16 = scalar_lea.vmem %s29_s13, 1024  ;;  %p1705_p1 = scmp.lt.s32.totalorder %s29_s13, %s29_s13 }
   0x5   :  { %p1701_p0 = scmp.ne.s32.totalorder %s29_s13, %s1700_s16  ;;  %p1706_p2 = scmp.lt.s32.totalorder %s1700_s16, %s1700_s16 }
   0x7   :  { %p1707_p3 = por %p1706_p2, %p1705_p1 }
   0x9   :  { %p1708_p4 = pnand %p1707_p3, %p1701_p0 }
   0xb   :  { %1711 = shalt.err (!%p1708_p4)
}
   0xc   :  { %s1780_s17 = smov 64   ;;  %s1781_s18 = smov 4  }
   0xd   :  { %34 = dma.hbm_to_vmem [thread:$0]  %s2178_s1, 1024, %s29_s13, [#allocation8], %s1780_s17, %s1780_s17, %s1781_s18  }
   0xe   :  { %s1720_s21 = scalar_lea.vmem %s17_s15, 1024  ;;  %p1725_p6 = scmp.lt.s32.totalorder %s17_s15, %s17_s15 }
   0xf   :  { %p1721_p5 = scmp.ne.s32.totalorder %s17_s15, %s1720_s21  ;;  %p1726_p7 = scmp.lt.s32.totalorder %s1720_s21, %s1720_s21 }
  0x11   :  { %p1727_p8 = por %p1726_p7, %p1725_p6 }
  0x13   :  { %p1728_p9 = pnand %p1727_p8, %p1721_p5 }
  0x15   :  { %1731 = shalt.err (!%p1728_p9)
}
  0x16   :  { %22 = dma.hbm_to_vmem [thread:$0]  %s2177_s0, 1024, %s17_s15, [#allocation5], %s1780_s17, %s1780_s17, %s1781_s18  }
  0x17   :  { %s1782_s24 = smov [#allocation9]  }
  0x18   :  { %s40_s25 = sshll.u32 %s1782_s24, 4  ;;  %s41_s25 = int_to_ptr.vmem [resolvable:$true] %s40_s25 }
  0x19   :  { %s1740_s26 = scalar_lea.vmem %s41_s25, 1024  ;;  %p1745_p11 = scmp.lt.s32.totalorder %s41_s25, %s41_s25 }
  0x1a   :  { %p1741_p10 = scmp.ne.s32.totalorder %s41_s25, %s1740_s26  ;;  %p1746_p12 = scmp.lt.s32.totalorder %s1740_s26, %s1740_s26 }
  0x1c   :  { %p1747_p13 = por %p1746_p12, %p1745_p11 }
  0x1e   :  { %p1748_p0 = pnand %p1747_p13, %p1741_p10 }
  0x20   :  { %1751 = shalt.err (!%p1748_p0)
}
  0x21   :  { %46 = dma.hbm_to_vmem [thread:$0]  %s2179_s2, 1024, %s41_s25, [#allocation8], %s1780_s17, %s1780_s17, %s1781_s18  }
  0x22   :  { %1772 = dma.done.wait [#allocation5], 1024  }
  0x23   :  { %1773 = vsyncadd [#allocation5], 4294966272 }
  0x24   :  { %1774 = dma.done.wait [#allocation8], 2048  }
  0x25   :  { %1775 = vsyncadd [#allocation8], 4294965248  ;;  %v1783_v0 = vmov 0.0   ;;  %vm1784_vm0 = vmmov 0   ;;  %v1785_v1 = vmov 0   ;;  %v1636_v2 = vld [vmem:[#allocation7 + $0x38] sm:$0xff]  }
  0x26   :  { %1307 = vmatprep.subr.bf16.mxu1 %v1783_v0  ;;  %1323 = vmatprep.mubr.msk.bf16.mxu1 %vm1784_vm0, %v1783_v0  ;;  %61 = vst [vmem:[#allocation3] sm:$0xf] %v1785_v1  ;;  %v1828_v3 = vld [vmem:[#allocation9 + $0x38] sm:$0xff]   ;;  %v1638_v4 = vld [vmem:[#allocation7 + $0x30] sm:$0xff]   ;;  %v1640_v6 = vld [vmem:[#allocation7 + $0x28] sm:$0xff]   ;;  %s1786_s0 = smov [#allocation10]  }
  0x27   :  { %1275 = vmatprep.subr.bf16.mxu0 %v1636_v2  ;;  %1308 = vmatpush3.bf16.msra.mxu1 %v1828_v3  ;;  %v1831_v5 = vld [vmem:[#allocation9 + $0x30] sm:$0xff]   ;;  %v1835_v7 = vld [vmem:[#allocation9 + $0x28] sm:$0xff]   ;;  %v1642_v8 = vld [vmem:[#allocation7 + $0x20] sm:$0xff]   ;;  %s1078_s2 = sshll.u32 %s1786_s0, 4  ;;  %s1079_s2 = int_to_ptr.vmem [resolvable:$true] %s1078_s2 }
  0x28   :  { %1276 = vmatpush3.bf16.msra.mxu0 %v1636_v2  ;;  %1309 = vmatprep.subr.bf16.mxu1 %v1783_v0  ;;  %v1839_v9 = vld [vmem:[#allocation9 + $0x20] sm:$0xff]   ;;  %v1644_v10 = vld [vmem:[#allocation7 + $0x18] sm:$0xff]   ;;  %v1646_v12 = vld [vmem:[#allocation7 + $0x10] sm:$0xff]   ;;  %s1752_s28 = scalar_lea.vmem %s1079_s2, 1024  ;;  %p1757_p2 = scmp.lt.s32.totalorder %s1079_s2, %s1079_s2 }
  0x29   :  { %1277 = vmatprep.subr.bf16.mxu0 %v1638_v4  ;;  %v1842_v11 = vld [vmem:[#allocation9 + $0x18] sm:$0xff]   ;;  %v1652_v13 = vld [vmem:[#allocation4] sm:$0xff]   ;;  %v1847_v14 = vld [vmem:[#allocation9 + $0x10] sm:$0xff]   ;;  %p1753_p1 = scmp.ne.s32.totalorder %s1079_s2, %s1752_s28  ;;  %p1758_p3 = scmp.lt.s32.totalorder %s1752_s28, %s1752_s28 }
  0x2a   :  { %1291 = vmatprep.mubr.bf16.mxu0 %v1652_v13  ;;  %v1648_v15 = vld [vmem:[#allocation7 + $0x8] sm:$0xff]   ;;  %v1650_v17 = vld [vmem:[#allocation7] sm:$0xff]   ;;  %v1654_v21 = vld [vmem:[#allocation4 + $0x10] sm:$0xff]  }
  0x2b   :  { %1310 = vmatpush3.bf16.msra.mxu1 %v1831_v5  ;;  %v1851_v16 = vld [vmem:[#allocation9 + $0x8] sm:$0xff]   ;;  %v1855_v18 = vld [vmem:[#allocation9] sm:$0xff]   ;;  %v1655_v22 = vld [vmem:[#allocation4 + $0x18] sm:$0xff]   ;;  %p1759_p4 = por %p1758_p3, %p1757_p2 }
  0x2c   :  { %1278 = vmatpush3.bf16.msra.mxu0 %v1638_v4  ;;  %1311 = vmatprep.subr.bf16.mxu1 %v1783_v0  ;;  %v1653_v19 = vld [vmem:[#allocation4 + $0x8] sm:$0xff]   ;;  %v1656_v23 = vld [vmem:[#allocation4 + $0x20] sm:$0xff]   ;;  %v1658_v25 = vld [vmem:[#allocation4 + $0x30] sm:$0xff]  }
  0x2d   :  { %1279 = vmatprep.subr.bf16.mxu0 %v1640_v6  ;;  %v319_v20 = vld [vmem:[#allocation3] sm:$0xf]  ;;  %v1657_v24 = vld [vmem:[#allocation4 + $0x28] sm:$0xff]   ;;  %p1760_p5 = pnand %p1759_p4, %p1753_p1 }
  0x2e   :  { %v1659_v26 = vld [vmem:[#allocation4 + $0x38] sm:$0xff]  }
  0x2f   :  { %1312 = vmatpush3.bf16.msra.mxu1 %v1835_v7 }
  0x30   :  { %1280 = vmatpush3.bf16.msra.mxu0 %v1640_v6  ;;  %1313 = vmatprep.subr.bf16.mxu1 %v1783_v0 }
  0x31   :  { %1281 = vmatprep.subr.bf16.mxu0 %v1642_v8 }
  0x33   :  { %1314 = vmatpush3.bf16.msra.mxu1 %v1839_v9 }
  0x34   :  { %1282 = vmatpush3.bf16.msra.mxu0 %v1642_v8  ;;  %1315 = vmatprep.subr.bf16.mxu1 %v1783_v0 }
  0x35   :  { %1283 = vmatprep.subr.bf16.mxu0 %v1644_v10 }
  0x37   :  { %1316 = vmatpush3.bf16.msra.mxu1 %v1842_v11 }
  0x38   :  { %1284 = vmatpush3.bf16.msra.mxu0 %v1644_v10  ;;  %1317 = vmatprep.subr.bf16.mxu1 %v1783_v0 }
  0x39   :  { %1285 = vmatprep.subr.bf16.mxu0 %v1646_v12 }
  0x3b   :  { %1318 = vmatpush3.bf16.msra.mxu1 %v1847_v14 }
  0x3c   :  { %1286 = vmatpush3.bf16.msra.mxu0 %v1646_v12  ;;  %1319 = vmatprep.subr.bf16.mxu1 %v1783_v0 }
  0x3d   :  { %1287 = vmatprep.subr.bf16.mxu0 %v1648_v15 }
  0x3f   :  { %1320 = vmatpush3.bf16.msra.mxu1 %v1851_v16 }
  0x40   :  { %1288 = vmatpush3.bf16.msra.mxu0 %v1648_v15  ;;  %1321 = vmatprep.subr.bf16.mxu1 %v1783_v0 }
  0x41   :  { %1289 = vmatprep.subr.bf16.mxu0 %v1650_v17 }
  0x43   :  { %1322 = vmatpush3.bf16.msra.mxu1 %v1855_v18 }
  0x44   :  { %1290 = vmatpush3.bf16.msra.mxu0 %v1650_v17  ;;  %1347 = vmatprep.subr.bf16.mxu1 %v1783_v0 }
  0x45   :  { %1327 = vmatprep.subr.bf16.mxu0 %v1783_v0 }
  0x46   :  { %1324 = vmatmul.mubr.bf16.vlgmr.msra.gmra.mxu1 %v319_v20 }
  0x47   :  { %1292 = vmatmul.mubr.bf16.vlgmr.msra.gmra.mxu0 %v1653_v19  ;;  %1348 = vmatpush3.bf16.msra.mxu1 %v1828_v3 }
  0x48   :  { %1328 = vmatpush3.bf16.msra.mxu0 %v1828_v3  ;;  %1295 = vmatprep.mubr.bf16.mxu0 %v1654_v21 }
  0x49   :  { %1329 = vmatprep.subr.bf16.mxu0 %v1783_v0  ;;  %1349 = vmatprep.subr.bf16.mxu1 %v1783_v0 }
  0x4a   :  { %1363 = vmatprep.mubr.msk.bf16.mxu1 %vm1784_vm0, %v1783_v0 }
  0x4b   :  { %1350 = vmatpush3.bf16.msra.mxu1 %v1831_v5 }
  0x4c   :  { %1330 = vmatpush3.bf16.msra.mxu0 %v1831_v5  ;;  %1351 = vmatprep.subr.bf16.mxu1 %v1783_v0 }
  0x4d   :  { %1331 = vmatprep.subr.bf16.mxu0 %v1783_v0 }
  0x4f   :  { %1296 = vmatmul.mubr.bf16.gmra.mxu0 %v1655_v22  ;;  %1352 = vmatpush3.bf16.msra.mxu1 %v1835_v7 }
  0x50   :  { %1332 = vmatpush3.bf16.msra.mxu0 %v1835_v7  ;;  %1299 = vmatprep.mubr.bf16.mxu0 %v1656_v23 }
  0x51   :  { %1333 = vmatprep.subr.bf16.mxu0 %v1783_v0  ;;  %1353 = vmatprep.subr.bf16.mxu1 %v1783_v0 }
  0x53   :  { %1354 = vmatpush3.bf16.msra.mxu1 %v1839_v9 }
  0x54   :  { %1334 = vmatpush3.bf16.msra.mxu0 %v1839_v9  ;;  %1355 = vmatprep.subr.bf16.mxu1 %v1783_v0 }
  0x55   :  { %1335 = vmatprep.subr.bf16.mxu0 %v1783_v0 }
  0x57   :  { %1300 = vmatmul.mubr.bf16.gmra.mxu0 %v1657_v24  ;;  %1356 = vmatpush3.bf16.msra.mxu1 %v1842_v11 }
  0x58   :  { %1336 = vmatpush3.bf16.msra.mxu0 %v1842_v11  ;;  %1357 = vmatprep.subr.bf16.mxu1 %v1783_v0 }
  0x59   :  { %1337 = vmatprep.subr.bf16.mxu0 %v1783_v0  ;;  %1303 = vmatprep.mubr.bf16.mxu0 %v1658_v25 }
  0x5b   :  { %1358 = vmatpush3.bf16.msra.mxu1 %v1847_v14 }
  0x5c   :  { %1338 = vmatpush3.bf16.msra.mxu0 %v1847_v14  ;;  %1359 = vmatprep.subr.bf16.mxu1 %v1783_v0 }
  0x5d   :  { %1339 = vmatprep.subr.bf16.mxu0 %v1783_v0 }
  0x5f   :  { %1360 = vmatpush3.bf16.msra.mxu1 %v1851_v16  ;;  %1304 = vmatmul.mubr.bf16.gmra.mxu0 %v1659_v26 }
  0x60   :  { %1340 = vmatpush3.bf16.msra.mxu0 %v1851_v16  ;;  %1361 = vmatprep.subr.bf16.mxu1 %v1783_v0 }
  0x61   :  { %1341 = vmatprep.subr.bf16.mxu0 %v1783_v0  ;;  %1343 = vmatprep.mubr.msk.bf16.mxu0 %vm1784_vm0, %v1783_v0 }
  0x63   :  { %1362 = vmatpush3.bf16.msra.mxu1 %v1855_v18 }
  0x64   :  { %1342 = vmatpush3.bf16.msra.mxu0 %v1855_v18  ;;  %1387 = vmatprep.subr.bf16.mxu1 %v1783_v0 }
  0x65   :  { %1367 = vmatprep.subr.bf16.mxu0 %v1783_v0 }
 0x106   :  { %v403_v27 = vpop.f32.mrf.mxu1 }
 0x107   :  { %v1897_v28 = vpop.f32.mrf.mxu0 }
 0x108   :  { %v1325_v29 = vpop.f32.mrf.mxu1 }
 0x109   :  { %v224_v30 = vpop.f32.mrf.mxu0 }
 0x10a   :  { %v404_v31 = vadd.f32 %v403_v27, %v224_v30  ;;  %v406_v32 = vpop.f32.mrf.mxu1 }
 0x10b   :  { %v1917_v36 = vpop.f32.mrf.mxu0 }
 0x10c   :  { %1660 = vtanh.f32 %v404_v31  ;;  %v1326_v33 = vpop.f32.mrf.mxu1 }
 0x10d   :  { %v227_v37 = vpop.f32.mrf.mxu0 }
 0x10f   :  { %v1919_v38 = vpop.f32.mrf.mxu0 }
 0x111   :  { %v1921_v39 = vpop.f32.mrf.mxu0 }
 0x113   :  { %v1923_v40 = vpop.f32.mrf.mxu0 }
 0x115   :  { %v1925_v41 = vpop.f32.mrf.mxu0 }
 0x117   :  { %v1927_v42 = vpop.f32.mrf.mxu0 }
 0x119   :  { %v1661_v34 = vpop.eup %1660  ;;  %v1929_v43 = vpop.f32.mrf.mxu0 }
 0x11a   :  { %v410_v35 = vpack.c.bf16 %v1661_v34, %v1661_v34 }
 0x11b   :  { %v1931_v44 = vpop.f32.mrf.mxu0 }
 0x11c   :  { %411 = vst [vmem:[#allocation10] sm:$0xf] %v410_v35  ;;  %1344 = vmatmul.mubr.bf16.vlgmr.msra.gmra.mxu0 %v410_v35 }
 0x11d   :  { %1368 = vmatpush3.bf16.msra.mxu0 %v1828_v3  ;;  %1383 = vmatprep.mubr.msk.bf16.mxu0 %vm1784_vm0, %v1783_v0  ;;  %v1933_v45 = vpop.f32.mrf.mxu0 }
 0x11e   :  { %1369 = vmatprep.subr.bf16.mxu0 %v1783_v0 }
 0x11f   :  { %v1935_v46 = vpop.f32.mrf.mxu0 }
 0x121   :  { %1370 = vmatpush3.bf16.msra.mxu0 %v1831_v5  ;;  %v1937_v47 = vpop.f32.mrf.mxu0 }
 0x122   :  { %1371 = vmatprep.subr.bf16.mxu0 %v1783_v0 }
 0x123   :  { %v1939_v48 = vpop.f32.mrf.mxu0 }
 0x125   :  { %1372 = vmatpush3.bf16.msra.mxu0 %v1835_v7  ;;  %v1941_v49 = vpop.f32.mrf.mxu0 }
 0x126   :  { %1373 = vmatprep.subr.bf16.mxu0 %v1783_v0 }
 0x129   :  { %1374 = vmatpush3.bf16.msra.mxu0 %v1839_v9 }
 0x12a   :  { %1375 = vmatprep.subr.bf16.mxu0 %v1783_v0 }
 0x12d   :  { %1376 = vmatpush3.bf16.msra.mxu0 %v1842_v11 }
 0x12e   :  { %1377 = vmatprep.subr.bf16.mxu0 %v1783_v0 }
 0x131   :  { %1378 = vmatpush3.bf16.msra.mxu0 %v1847_v14 }
 0x132   :  { %1379 = vmatprep.subr.bf16.mxu0 %v1783_v0 }
 0x135   :  { %1380 = vmatpush3.bf16.msra.mxu0 %v1851_v16 }
 0x136   :  { %1381 = vmatprep.subr.bf16.mxu0 %v1783_v0 }
 0x139   :  { %1382 = vmatpush3.bf16.msra.mxu0 %v1855_v18 }
 0x13a   :  { %1407 = vmatprep.subr.bf16.mxu0 %v1783_v0 }
 0x1dc   :  { %v447_v50 = vpop.f32.mrf.mxu0 }
 0x1dd   :  { %v448_v51 = vadd.f32 %v447_v50, %v227_v37 }
 0x1de   :  { %v1345_v52 = vpop.f32.mrf.mxu0 }
 0x1df   :  { %1662 = vtanh.f32 %v448_v51 }
 0x1e0   :  { %v450_v53 = vpop.f32.mrf.mxu0 }
 0x1e2   :  { %v1346_v54 = vpop.f32.mrf.mxu0 }
 0x1ec   :  { %v1663_v55 = vpop.eup %1662 }
 0x1ed   :  { %v454_v56 = vpack.c.bf16 %v1663_v55, %v1663_v55 }
 0x1ef   :  { %455 = vst [vmem:[#allocation10 + $0x4] sm:$0xf] %v454_v56  ;;  %1364 = vmatmul.mubr.bf16.vlgmr.msra.gmra.mxu1 %v454_v56 }
 0x1f0   :  { %1388 = vmatpush3.bf16.msra.mxu1 %v1828_v3  ;;  %1403 = vmatprep.mubr.msk.bf16.mxu1 %vm1784_vm0, %v1783_v0 }
 0x1f1   :  { %1389 = vmatprep.subr.bf16.mxu1 %v1783_v0 }
 0x1f4   :  { %1390 = vmatpush3.bf16.msra.mxu1 %v1831_v5 }
 0x1f5   :  { %1391 = vmatprep.subr.bf16.mxu1 %v1783_v0 }
 0x1f8   :  { %1392 = vmatpush3.bf16.msra.mxu1 %v1835_v7 }
 0x1f9   :  { %1393 = vmatprep.subr.bf16.mxu1 %v1783_v0 }
 0x1fc   :  { %1394 = vmatpush3.bf16.msra.mxu1 %v1839_v9 }
 0x1fd   :  { %1395 = vmatprep.subr.bf16.mxu1 %v1783_v0 }
 0x200   :  { %1396 = vmatpush3.bf16.msra.mxu1 %v1842_v11 }
 0x201   :  { %1397 = vmatprep.subr.bf16.mxu1 %v1783_v0 }
 0x204   :  { %1398 = vmatpush3.bf16.msra.mxu1 %v1847_v14 }
 0x205   :  { %1399 = vmatprep.subr.bf16.mxu1 %v1783_v0 }
 0x208   :  { %1400 = vmatpush3.bf16.msra.mxu1 %v1851_v16 }
 0x209   :  { %1401 = vmatprep.subr.bf16.mxu1 %v1783_v0 }
 0x20c   :  { %1402 = vmatpush3.bf16.msra.mxu1 %v1855_v18 }
 0x20d   :  { %1427 = vmatprep.subr.bf16.mxu1 %v1783_v0 }
 0x2af   :  { %v491_v57 = vpop.f32.mrf.mxu1 }
 0x2b0   :  { %v492_v58 = vadd.f32 %v1897_v28, %v491_v57 }
 0x2b1   :  { %v1365_v59 = vpop.f32.mrf.mxu1 }
 0x2b2   :  { %1664 = vtanh.f32 %v492_v58 }
 0x2b3   :  { %v494_v60 = vpop.f32.mrf.mxu1 }
 0x2b5   :  { %v1366_v61 = vpop.f32.mrf.mxu1 }
 0x2bf   :  { %v1665_v62 = vpop.eup %1664 }
 0x2c0   :  { %v498_v63 = vpack.c.bf16 %v1665_v62, %v1665_v62 }
 0x2c2   :  { %499 = vst [vmem:[#allocation10 + $0x8] sm:$0xf] %v498_v63  ;;  %1384 = vmatmul.mubr.bf16.vlgmr.msra.gmra.mxu0 %v498_v63 }
 0x2c3   :  { %1408 = vmatpush3.bf16.msra.mxu0 %v1828_v3  ;;  %1423 = vmatprep.mubr.msk.bf16.mxu0 %vm1784_vm0, %v1783_v0 }
 0x2c4   :  { %1409 = vmatprep.subr.bf16.mxu0 %v1783_v0 }
 0x2c7   :  { %1410 = vmatpush3.bf16.msra.mxu0 %v1831_v5 }
 0x2c8   :  { %1411 = vmatprep.subr.bf16.mxu0 %v1783_v0 }
 0x2cb   :  { %1412 = vmatpush3.bf16.msra.mxu0 %v1835_v7 }
 0x2cc   :  { %1413 = vmatprep.subr.bf16.mxu0 %v1783_v0 }
 0x2cf   :  { %1414 = vmatpush3.bf16.msra.mxu0 %v1839_v9 }
 0x2d0   :  { %1415 = vmatprep.subr.bf16.mxu0 %v1783_v0 }
 0x2d3   :  { %1416 = vmatpush3.bf16.msra.mxu0 %v1842_v11 }
 0x2d4   :  { %1417 = vmatprep.subr.bf16.mxu0 %v1783_v0 }
 0x2d7   :  { %1418 = vmatpush3.bf16.msra.mxu0 %v1847_v14 }
 0x2d8   :  { %1419 = vmatprep.subr.bf16.mxu0 %v1783_v0 }
 0x2db   :  { %1420 = vmatpush3.bf16.msra.mxu0 %v1851_v16 }
 0x2dc   :  { %1421 = vmatprep.subr.bf16.mxu0 %v1783_v0 }
 0x2df   :  { %1422 = vmatpush3.bf16.msra.mxu0 %v1855_v18 }
 0x2e0   :  { %1447 = vmatprep.subr.bf16.mxu0 %v1783_v0 }
 0x382   :  { %v535_v1 = vpop.f32.mrf.mxu0 }
 0x383   :  { %v536_v2 = vadd.f32 %v1917_v36, %v535_v1 }
 0x384   :  { %v1385_v4 = vpop.f32.mrf.mxu0 }
 0x385   :  { %1666 = vtanh.f32 %v536_v2 }
 0x386   :  { %v538_v6 = vpop.f32.mrf.mxu0 }
 0x388   :  { %v1386_v8 = vpop.f32.mrf.mxu0 }
 0x392   :  { %v1667_v10 = vpop.eup %1666 }
 0x393   :  { %v542_v12 = vpack.c.bf16 %v1667_v10, %v1667_v10 }
 0x395   :  { %543 = vst [vmem:[#allocation10 + $0xc] sm:$0xf] %v542_v12  ;;  %1404 = vmatmul.mubr.bf16.vlgmr.msra.gmra.mxu1 %v542_v12 }
 0x396   :  { %1428 = vmatpush3.bf16.msra.mxu1 %v1828_v3  ;;  %1443 = vmatprep.mubr.msk.bf16.mxu1 %vm1784_vm0, %v1783_v0 }
 0x397   :  { %1429 = vmatprep.subr.bf16.mxu1 %v1783_v0 }
 0x39a   :  { %1430 = vmatpush3.bf16.msra.mxu1 %v1831_v5 }
 0x39b   :  { %1431 = vmatprep.subr.bf16.mxu1 %v1783_v0 }
 0x39e   :  { %1432 = vmatpush3.bf16.msra.mxu1 %v1835_v7 }
 0x39f   :  { %1433 = vmatprep.subr.bf16.mxu1 %v1783_v0 }
 0x3a2   :  { %1434 = vmatpush3.bf16.msra.mxu1 %v1839_v9 }
 0x3a3   :  { %1435 = vmatprep.subr.bf16.mxu1 %v1783_v0 }
 0x3a6   :  { %1436 = vmatpush3.bf16.msra.mxu1 %v1842_v11 }
 0x3a7   :  { %1437 = vmatprep.subr.bf16.mxu1 %v1783_v0 }
 0x3aa   :  { %1438 = vmatpush3.bf16.msra.mxu1 %v1847_v14 }
 0x3ab   :  { %1439 = vmatprep.subr.bf16.mxu1 %v1783_v0 }
 0x3ae   :  { %1440 = vmatpush3.bf16.msra.mxu1 %v1851_v16 }
 0x3af   :  { %1441 = vmatprep.subr.bf16.mxu1 %v1783_v0 }
 0x3b2   :  { %1442 = vmatpush3.bf16.msra.mxu1 %v1855_v18 }
 0x3b3   :  { %1467 = vmatprep.subr.bf16.mxu1 %v1783_v0 }
 0x455   :  { %v579_v13 = vpop.f32.mrf.mxu1 }
 0x456   :  { %v580_v15 = vadd.f32 %v579_v13, %v1921_v39 }
 0x457   :  { %v1405_v17 = vpop.f32.mrf.mxu1 }
 0x458   :  { %1668 = vtanh.f32 %v580_v15 }
 0x459   :  { %v582_v19 = vpop.f32.mrf.mxu1 }
 0x45b   :  { %v1406_v20 = vpop.f32.mrf.mxu1 }
 0x465   :  { %v1669_v21 = vpop.eup %1668 }
 0x466   :  { %v586_v22 = vpack.c.bf16 %v1669_v21, %v1669_v21 }
 0x468   :  { %587 = vst [vmem:[#allocation10 + $0x10] sm:$0xf] %v586_v22  ;;  %1424 = vmatmul.mubr.bf16.vlgmr.msra.gmra.mxu0 %v586_v22 }
 0x469   :  { %1448 = vmatpush3.bf16.msra.mxu0 %v1828_v3  ;;  %1463 = vmatprep.mubr.msk.bf16.mxu0 %vm1784_vm0, %v1783_v0 }
 0x46a   :  { %1449 = vmatprep.subr.bf16.mxu0 %v1783_v0 }
 0x46d   :  { %1450 = vmatpush3.bf16.msra.mxu0 %v1831_v5 }
 0x46e   :  { %1451 = vmatprep.subr.bf16.mxu0 %v1783_v0 }
 0x471   :  { %1452 = vmatpush3.bf16.msra.mxu0 %v1835_v7 }
 0x472   :  { %1453 = vmatprep.subr.bf16.mxu0 %v1783_v0 }
 0x475   :  { %1454 = vmatpush3.bf16.msra.mxu0 %v1839_v9 }
 0x476   :  { %1455 = vmatprep.subr.bf16.mxu0 %v1783_v0 }
 0x479   :  { %1456 = vmatpush3.bf16.msra.mxu0 %v1842_v11 }
 0x47a   :  { %1457 = vmatprep.subr.bf16.mxu0 %v1783_v0 }
 0x47d   :  { %1458 = vmatpush3.bf16.msra.mxu0 %v1847_v14 }
 0x47e   :  { %1459 = vmatprep.subr.bf16.mxu0 %v1783_v0 }
 0x481   :  { %1460 = vmatpush3.bf16.msra.mxu0 %v1851_v16 }
 0x482   :  { %1461 = vmatprep.subr.bf16.mxu0 %v1783_v0 }
 0x485   :  { %1462 = vmatpush3.bf16.msra.mxu0 %v1855_v18 }
 0x486   :  { %1487 = vmatprep.subr.bf16.mxu0 %v1783_v0 }
 0x528   :  { %v623_v23 = vpop.f32.mrf.mxu0 }
 0x529   :  { %v624_v24 = vadd.f32 %v623_v23, %v1925_v41 }
 0x52a   :  { %v1425_v25 = vpop.f32.mrf.mxu0 }
 0x52b   :  { %1670 = vtanh.f32 %v624_v24 }
 0x52c   :  { %v626_v26 = vpop.f32.mrf.mxu0 }
 0x52e   :  { %v1426_v27 = vpop.f32.mrf.mxu0 }
 0x538   :  { %v1671_v28 = vpop.eup %1670 }
 0x539   :  { %v630_v29 = vpack.c.bf16 %v1671_v28, %v1671_v28 }
 0x53b   :  { %631 = vst [vmem:[#allocation10 + $0x14] sm:$0xf] %v630_v29  ;;  %1444 = vmatmul.mubr.bf16.vlgmr.msra.gmra.mxu1 %v630_v29 }
 0x53c   :  { %1468 = vmatpush3.bf16.msra.mxu1 %v1828_v3  ;;  %1483 = vmatprep.mubr.msk.bf16.mxu1 %vm1784_vm0, %v1783_v0 }
 0x53d   :  { %1469 = vmatprep.subr.bf16.mxu1 %v1783_v0 }
 0x540   :  { %1470 = vmatpush3.bf16.msra.mxu1 %v1831_v5 }
 0x541   :  { %1471 = vmatprep.subr.bf16.mxu1 %v1783_v0 }
 0x544   :  { %1472 = vmatpush3.bf16.msra.mxu1 %v1835_v7 }
 0x545   :  { %1473 = vmatprep.subr.bf16.mxu1 %v1783_v0 }
 0x548   :  { %1474 = vmatpush3.bf16.msra.mxu1 %v1839_v9 }
 0x549   :  { %1475 = vmatprep.subr.bf16.mxu1 %v1783_v0 }
 0x54c   :  { %1476 = vmatpush3.bf16.msra.mxu1 %v1842_v11 }
 0x54d   :  { %1477 = vmatprep.subr.bf16.mxu1 %v1783_v0 }
 0x550   :  { %1478 = vmatpush3.bf16.msra.mxu1 %v1847_v14 }
 0x551   :  { %1479 = vmatprep.subr.bf16.mxu1 %v1783_v0 }
 0x554   :  { %1480 = vmatpush3.bf16.msra.mxu1 %v1851_v16 }
 0x555   :  { %1481 = vmatprep.subr.bf16.mxu1 %v1783_v0 }
 0x558   :  { %1482 = vmatpush3.bf16.msra.mxu1 %v1855_v18 }
 0x559   :  { %1507 = vmatprep.subr.bf16.mxu1 %v1783_v0 }
 0x5fb   :  { %v667_v30 = vpop.f32.mrf.mxu1 }
 0x5fc   :  { %v668_v31 = vadd.f32 %v1919_v38, %v667_v30 }
 0x5fd   :  { %v1445_v32 = vpop.f32.mrf.mxu1 }
 0x5fe   :  { %1672 = vtanh.f32 %v668_v31 }
 0x5ff   :  { %v670_v33 = vpop.f32.mrf.mxu1 }
 0x601   :  { %v1446_v34 = vpop.f32.mrf.mxu1 }
 0x60b   :  { %v1673_v35 = vpop.eup %1672 }
 0x60c   :  { %v674_v36 = vpack.c.bf16 %v1673_v35, %v1673_v35 }
 0x60e   :  { %675 = vst [vmem:[#allocation10 + $0x18] sm:$0xf] %v674_v36  ;;  %1464 = vmatmul.mubr.bf16.vlgmr.msra.gmra.mxu0 %v674_v36 }
 0x60f   :  { %1488 = vmatpush3.bf16.msra.mxu0 %v1828_v3  ;;  %1503 = vmatprep.mubr.msk.bf16.mxu0 %vm1784_vm0, %v1783_v0 }
 0x610   :  { %1489 = vmatprep.subr.bf16.mxu0 %v1783_v0 }
 0x613   :  { %1490 = vmatpush3.bf16.msra.mxu0 %v1831_v5 }
 0x614   :  { %1491 = vmatprep.subr.bf16.mxu0 %v1783_v0 }
 0x617   :  { %1492 = vmatpush3.bf16.msra.mxu0 %v1835_v7 }
 0x618   :  { %1493 = vmatprep.subr.bf16.mxu0 %v1783_v0 }
 0x61b   :  { %1494 = vmatpush3.bf16.msra.mxu0 %v1839_v9 }
 0x61c   :  { %1495 = vmatprep.subr.bf16.mxu0 %v1783_v0 }
 0x61f   :  { %1496 = vmatpush3.bf16.msra.mxu0 %v1842_v11 }
 0x620   :  { %1497 = vmatprep.subr.bf16.mxu0 %v1783_v0 }
 0x623   :  { %1498 = vmatpush3.bf16.msra.mxu0 %v1847_v14 }
 0x624   :  { %1499 = vmatprep.subr.bf16.mxu0 %v1783_v0 }
 0x627   :  { %1500 = vmatpush3.bf16.msra.mxu0 %v1851_v16 }
 0x628   :  { %1501 = vmatprep.subr.bf16.mxu0 %v1783_v0 }
 0x62b   :  { %1502 = vmatpush3.bf16.msra.mxu0 %v1855_v18 }
 0x62c   :  { %1527 = vmatprep.subr.bf16.mxu0 %v1783_v0 }
 0x6ce   :  { %v711_v37 = vpop.f32.mrf.mxu0 }
 0x6cf   :  { %v712_v38 = vadd.f32 %v1923_v40, %v711_v37 }
 0x6d0   :  { %v1465_v39 = vpop.f32.mrf.mxu0 }
 0x6d1   :  { %1674 = vtanh.f32 %v712_v38 }
 0x6d2   :  { %v714_v41 = vpop.f32.mrf.mxu0 }
 0x6d4   :  { %v1466_v50 = vpop.f32.mrf.mxu0 }
 0x6de   :  { %v1675_v51 = vpop.eup %1674 }
 0x6df   :  { %v718_v52 = vpack.c.bf16 %v1675_v51, %v1675_v51 }
 0x6e1   :  { %719 = vst [vmem:[#allocation10 + $0x1c] sm:$0xf] %v718_v52  ;;  %1484 = vmatmul.mubr.bf16.vlgmr.msra.gmra.mxu1 %v718_v52 }
 0x6e2   :  { %1508 = vmatpush3.bf16.msra.mxu1 %v1828_v3  ;;  %1523 = vmatprep.mubr.msk.bf16.mxu1 %vm1784_vm0, %v1783_v0 }
 0x6e3   :  { %1509 = vmatprep.subr.bf16.mxu1 %v1783_v0 }
 0x6e6   :  { %1510 = vmatpush3.bf16.msra.mxu1 %v1831_v5 }
 0x6e7   :  { %1511 = vmatprep.subr.bf16.mxu1 %v1783_v0 }
 0x6ea   :  { %1512 = vmatpush3.bf16.msra.mxu1 %v1835_v7 }
 0x6eb   :  { %1513 = vmatprep.subr.bf16.mxu1 %v1783_v0 }
 0x6ee   :  { %1514 = vmatpush3.bf16.msra.mxu1 %v1839_v9 }
 0x6ef   :  { %1515 = vmatprep.subr.bf16.mxu1 %v1783_v0 }
 0x6f2   :  { %1516 = vmatpush3.bf16.msra.mxu1 %v1842_v11 }
 0x6f3   :  { %1517 = vmatprep.subr.bf16.mxu1 %v1783_v0 }
 0x6f6   :  { %1518 = vmatpush3.bf16.msra.mxu1 %v1847_v14 }
 0x6f7   :  { %1519 = vmatprep.subr.bf16.mxu1 %v1783_v0 }
 0x6fa   :  { %1520 = vmatpush3.bf16.msra.mxu1 %v1851_v16 }
 0x6fb   :  { %1521 = vmatprep.subr.bf16.mxu1 %v1783_v0 }
 0x6fe   :  { %1522 = vmatpush3.bf16.msra.mxu1 %v1855_v18 }
 0x6ff   :  { %1547 = vmatprep.subr.bf16.mxu1 %v1783_v0 }
 0x7a1   :  { %v755_v40 = vpop.f32.mrf.mxu1 }
 0x7a2   :  { %v756_v53 = vadd.f32 %v755_v40, %v1929_v43 }
 0x7a3   :  { %v1485_v54 = vpop.f32.mrf.mxu1 }
 0x7a4   :  { %1676 = vtanh.f32 %v756_v53 }
 0x7a5   :  { %v758_v55 = vpop.f32.mrf.mxu1 }
 0x7a7   :  { %v1486_v56 = vpop.f32.mrf.mxu1 }
 0x7b1   :  { %v1677_v57 = vpop.eup %1676 }
 0x7b2   :  { %v762_v58 = vpack.c.bf16 %v1677_v57, %v1677_v57 }
 0x7b4   :  { %763 = vst [vmem:[#allocation10 + $0x20] sm:$0xf] %v762_v58  ;;  %1504 = vmatmul.mubr.bf16.vlgmr.msra.gmra.mxu0 %v762_v58 }
 0x7b5   :  { %1528 = vmatpush3.bf16.msra.mxu0 %v1828_v3  ;;  %1543 = vmatprep.mubr.msk.bf16.mxu0 %vm1784_vm0, %v1783_v0 }
 0x7b6   :  { %1529 = vmatprep.subr.bf16.mxu0 %v1783_v0 }
 0x7b9   :  { %1530 = vmatpush3.bf16.msra.mxu0 %v1831_v5 }
 0x7ba   :  { %1531 = vmatprep.subr.bf16.mxu0 %v1783_v0 }
 0x7bd   :  { %1532 = vmatpush3.bf16.msra.mxu0 %v1835_v7 }
 0x7be   :  { %1533 = vmatprep.subr.bf16.mxu0 %v1783_v0 }
 0x7c1   :  { %1534 = vmatpush3.bf16.msra.mxu0 %v1839_v9 }
 0x7c2   :  { %1535 = vmatprep.subr.bf16.mxu0 %v1783_v0 }
 0x7c5   :  { %1536 = vmatpush3.bf16.msra.mxu0 %v1842_v11 }
 0x7c6   :  { %1537 = vmatprep.subr.bf16.mxu0 %v1783_v0 }
 0x7c9   :  { %1538 = vmatpush3.bf16.msra.mxu0 %v1847_v14 }
 0x7ca   :  { %1539 = vmatprep.subr.bf16.mxu0 %v1783_v0 }
 0x7cd   :  { %1540 = vmatpush3.bf16.msra.mxu0 %v1851_v16 }
 0x7ce   :  { %1541 = vmatprep.subr.bf16.mxu0 %v1783_v0 }
 0x7d1   :  { %1542 = vmatpush3.bf16.msra.mxu0 %v1855_v18 }
 0x7d2   :  { %1567 = vmatprep.subr.bf16.mxu0 %v1783_v0 }
 0x874   :  { %v799_v43 = vpop.f32.mrf.mxu0 }
 0x875   :  { %v800_v59 = vadd.f32 %v799_v43, %v1933_v45 }
 0x876   :  { %v1505_v60 = vpop.f32.mrf.mxu0 }
 0x877   :  { %1678 = vtanh.f32 %v800_v59 }
 0x878   :  { %v802_v61 = vpop.f32.mrf.mxu0 }
 0x87a   :  { %v1506_v62 = vpop.f32.mrf.mxu0 }
 0x884   :  { %v1679_v63 = vpop.eup %1678 }
 0x885   :  { %v806_v1 = vpack.c.bf16 %v1679_v63, %v1679_v63 }
 0x887   :  { %807 = vst [vmem:[#allocation10 + $0x24] sm:$0xf] %v806_v1  ;;  %1524 = vmatmul.mubr.bf16.vlgmr.msra.gmra.mxu1 %v806_v1 }
 0x888   :  { %1548 = vmatpush3.bf16.msra.mxu1 %v1828_v3  ;;  %1563 = vmatprep.mubr.msk.bf16.mxu1 %vm1784_vm0, %v1783_v0 }
 0x889   :  { %1549 = vmatprep.subr.bf16.mxu1 %v1783_v0 }
 0x88c   :  { %1550 = vmatpush3.bf16.msra.mxu1 %v1831_v5 }
 0x88d   :  { %1551 = vmatprep.subr.bf16.mxu1 %v1783_v0 }
 0x890   :  { %1552 = vmatpush3.bf16.msra.mxu1 %v1835_v7 }
 0x891   :  { %1553 = vmatprep.subr.bf16.mxu1 %v1783_v0 }
 0x894   :  { %1554 = vmatpush3.bf16.msra.mxu1 %v1839_v9 }
 0x895   :  { %1555 = vmatprep.subr.bf16.mxu1 %v1783_v0 }
 0x898   :  { %1556 = vmatpush3.bf16.msra.mxu1 %v1842_v11 }
 0x899   :  { %1557 = vmatprep.subr.bf16.mxu1 %v1783_v0 }
 0x89c   :  { %1558 = vmatpush3.bf16.msra.mxu1 %v1847_v14 }
 0x89d   :  { %1559 = vmatprep.subr.bf16.mxu1 %v1783_v0 }
 0x8a0   :  { %1560 = vmatpush3.bf16.msra.mxu1 %v1851_v16 }
 0x8a1   :  { %1561 = vmatprep.subr.bf16.mxu1 %v1783_v0 }
 0x8a4   :  { %1562 = vmatpush3.bf16.msra.mxu1 %v1855_v18 }
 0x8a5   :  { %1587 = vmatprep.subr.bf16.mxu1 %v1783_v0 }
 0x947   :  { %v843_v45 = vpop.f32.mrf.mxu1 }
 0x948   :  { %v844_v2 = vadd.f32 %v1927_v42, %v843_v45 }
 0x949   :  { %v1525_v4 = vpop.f32.mrf.mxu1 }
 0x94a   :  { %1680 = vtanh.f32 %v844_v2 }
 0x94b   :  { %v846_v6 = vpop.f32.mrf.mxu1 }
 0x94d   :  { %v1526_v8 = vpop.f32.mrf.mxu1 }
 0x957   :  { %v1681_v10 = vpop.eup %1680 }
 0x958   :  { %v850_v12 = vpack.c.bf16 %v1681_v10, %v1681_v10 }
 0x95a   :  { %851 = vst [vmem:[#allocation10 + $0x28] sm:$0xf] %v850_v12  ;;  %1544 = vmatmul.mubr.bf16.vlgmr.msra.gmra.mxu0 %v850_v12 }
 0x95b   :  { %1568 = vmatpush3.bf16.msra.mxu0 %v1828_v3  ;;  %1583 = vmatprep.mubr.msk.bf16.mxu0 %vm1784_vm0, %v1783_v0 }
 0x95c   :  { %1569 = vmatprep.subr.bf16.mxu0 %v1783_v0 }
 0x95f   :  { %1570 = vmatpush3.bf16.msra.mxu0 %v1831_v5 }
 0x960   :  { %1571 = vmatprep.subr.bf16.mxu0 %v1783_v0 }
 0x963   :  { %1572 = vmatpush3.bf16.msra.mxu0 %v1835_v7 }
 0x964   :  { %1573 = vmatprep.subr.bf16.mxu0 %v1783_v0 }
 0x967   :  { %1574 = vmatpush3.bf16.msra.mxu0 %v1839_v9 }
 0x968   :  { %1575 = vmatprep.subr.bf16.mxu0 %v1783_v0 }
 0x96b   :  { %1576 = vmatpush3.bf16.msra.mxu0 %v1842_v11 }
 0x96c   :  { %1577 = vmatprep.subr.bf16.mxu0 %v1783_v0 }
 0x96f   :  { %1578 = vmatpush3.bf16.msra.mxu0 %v1847_v14 }
 0x970   :  { %1579 = vmatprep.subr.bf16.mxu0 %v1783_v0 }
 0x973   :  { %1580 = vmatpush3.bf16.msra.mxu0 %v1851_v16 }
 0x974   :  { %1581 = vmatprep.subr.bf16.mxu0 %v1783_v0 }
 0x977   :  { %1582 = vmatpush3.bf16.msra.mxu0 %v1855_v18 }
 0x978   :  { %1607 = vmatprep.subr.bf16.mxu0 %v1783_v0 }
 0xa1a   :  { %v887_v42 = vpop.f32.mrf.mxu0 }
 0xa1b   :  { %v888_v13 = vadd.f32 %v1931_v44, %v887_v42 }
 0xa1c   :  { %v1545_v15 = vpop.f32.mrf.mxu0 }
 0xa1d   :  { %1682 = vtanh.f32 %v888_v13 }
 0xa1e   :  { %v890_v17 = vpop.f32.mrf.mxu0 }
 0xa20   :  { %v1546_v19 = vpop.f32.mrf.mxu0 }
 0xa2a   :  { %v1683_v20 = vpop.eup %1682 }
 0xa2b   :  { %v894_v21 = vpack.c.bf16 %v1683_v20, %v1683_v20 }
 0xa2d   :  { %895 = vst [vmem:[#allocation10 + $0x2c] sm:$0xf] %v894_v21  ;;  %1564 = vmatmul.mubr.bf16.vlgmr.msra.gmra.mxu1 %v894_v21 }
 0xa2e   :  { %1588 = vmatpush3.bf16.msra.mxu1 %v1828_v3  ;;  %1603 = vmatprep.mubr.msk.bf16.mxu1 %vm1784_vm0, %v1783_v0 }
 0xa2f   :  { %1589 = vmatprep.subr.bf16.mxu1 %v1783_v0 }
 0xa32   :  { %1590 = vmatpush3.bf16.msra.mxu1 %v1831_v5 }
 0xa33   :  { %1591 = vmatprep.subr.bf16.mxu1 %v1783_v0 }
 0xa36   :  { %1592 = vmatpush3.bf16.msra.mxu1 %v1835_v7 }
 0xa37   :  { %1593 = vmatprep.subr.bf16.mxu1 %v1783_v0 }
 0xa3a   :  { %1594 = vmatpush3.bf16.msra.mxu1 %v1839_v9 }
 0xa3b   :  { %1595 = vmatprep.subr.bf16.mxu1 %v1783_v0 }
 0xa3e   :  { %1596 = vmatpush3.bf16.msra.mxu1 %v1842_v11 }
 0xa3f   :  { %1597 = vmatprep.subr.bf16.mxu1 %v1783_v0 }
 0xa42   :  { %1598 = vmatpush3.bf16.msra.mxu1 %v1847_v14 }
 0xa43   :  { %1599 = vmatprep.subr.bf16.mxu1 %v1783_v0 }
 0xa46   :  { %1600 = vmatpush3.bf16.msra.mxu1 %v1851_v16 }
 0xa47   :  { %1601 = vmatprep.subr.bf16.mxu1 %v1783_v0 }
 0xa4a   :  { %1602 = vmatpush3.bf16.msra.mxu1 %v1855_v18 }
 0xaed   :  { %v931_v44 = vpop.f32.mrf.mxu1 }
 0xaee   :  { %v932_v22 = vadd.f32 %v931_v44, %v1937_v47 }
 0xaef   :  { %v1565_v23 = vpop.f32.mrf.mxu1 }
 0xaf0   :  { %1684 = vtanh.f32 %v932_v22 }
 0xaf1   :  { %v934_v24 = vpop.f32.mrf.mxu1 }
 0xaf3   :  { %v1566_v25 = vpop.f32.mrf.mxu1 }
 0xafd   :  { %v1685_v26 = vpop.eup %1684 }
 0xafe   :  { %v938_v27 = vpack.c.bf16 %v1685_v26, %v1685_v26 }
 0xb00   :  { %939 = vst [vmem:[#allocation10 + $0x30] sm:$0xf] %v938_v27  ;;  %1584 = vmatmul.mubr.bf16.vlgmr.msra.gmra.mxu0 %v938_v27 }
 0xb01   :  { %1608 = vmatpush3.bf16.msra.mxu0 %v1828_v3  ;;  %1623 = vmatprep.mubr.msk.bf16.mxu0 %vm1784_vm0, %v1783_v0 }
 0xb02   :  { %1609 = vmatprep.subr.bf16.mxu0 %v1783_v0 }
 0xb05   :  { %1610 = vmatpush3.bf16.msra.mxu0 %v1831_v5 }
 0xb06   :  { %1611 = vmatprep.subr.bf16.mxu0 %v1783_v0 }
 0xb09   :  { %1612 = vmatpush3.bf16.msra.mxu0 %v1835_v7 }
 0xb0a   :  { %1613 = vmatprep.subr.bf16.mxu0 %v1783_v0 }
 0xb0d   :  { %1614 = vmatpush3.bf16.msra.mxu0 %v1839_v9 }
 0xb0e   :  { %1615 = vmatprep.subr.bf16.mxu0 %v1783_v0 }
 0xb11   :  { %1616 = vmatpush3.bf16.msra.mxu0 %v1842_v11 }
 0xb12   :  { %1617 = vmatprep.subr.bf16.mxu0 %v1783_v0 }
 0xb15   :  { %1618 = vmatpush3.bf16.msra.mxu0 %v1847_v14 }
 0xb16   :  { %1619 = vmatprep.subr.bf16.mxu0 %v1783_v0 }
 0xb19   :  { %1620 = vmatpush3.bf16.msra.mxu0 %v1851_v16 }
 0xb1a   :  { %1621 = vmatprep.subr.bf16.mxu0 %v1783_v0 }
 0xb1d   :  { %1622 = vmatpush3.bf16.msra.mxu0 %v1855_v18 }
 0xbc0   :  { %v975_v3 = vpop.f32.mrf.mxu0 }
 0xbc1   :  { %v976_v5 = vadd.f32 %v975_v3, %v1941_v49 }
 0xbc2   :  { %v1585_v7 = vpop.f32.mrf.mxu0 }
 0xbc3   :  { %1686 = vtanh.f32 %v976_v5 }
 0xbc4   :  { %v978_v9 = vpop.f32.mrf.mxu0 }
 0xbc6   :  { %v1586_v47 = vpop.f32.mrf.mxu0 }
 0xbd0   :  { %v1687_v11 = vpop.eup %1686 }
 0xbd1   :  { %v982_v28 = vpack.c.bf16 %v1687_v11, %v1687_v11 }
 0xbd3   :  { %983 = vst [vmem:[#allocation10 + $0x34] sm:$0xf] %v982_v28  ;;  %1604 = vmatmul.mubr.bf16.vlgmr.msra.gmra.mxu1 %v982_v28 }
 0xc93   :  { %v1019_v14 = vpop.f32.mrf.mxu1 }
 0xc94   :  { %v1020_v29 = vadd.f32 %v1935_v46, %v1019_v14 }
 0xc95   :  { %v1605_v30 = vpop.f32.mrf.mxu1 }
 0xc96   :  { %1688 = vtanh.f32 %v1020_v29 }
 0xc97   :  { %v1022_v16 = vpop.f32.mrf.mxu1 }
 0xc99   :  { %v1606_v0 = vpop.f32.mrf.mxu1 }
 0xca3   :  { %v1689_v31 = vpop.eup %1688 }
 0xca4   :  { %v1026_v18 = vpack.c.bf16 %v1689_v31, %v1689_v31 }
 0xca6   :  { %1027 = vst [vmem:[#allocation10 + $0x38] sm:$0xf] %v1026_v18  ;;  %1624 = vmatmul.mubr.bf16.vlgmr.msra.gmra.mxu0 %v1026_v18 }
 0xd66   :  { %v1063_v49 = vpop.f32.mrf.mxu0 }
 0xd67   :  { %v1064_v32 = vadd.f32 %v1939_v48, %v1063_v49 }
 0xd68   :  { %v1625_v33 = vpop.f32.mrf.mxu0 }
 0xd69   :  { %1690 = vtanh.f32 %v1064_v32 }
 0xd6a   :  { %v1066_v34 = vpop.f32.mrf.mxu0 }
 0xd6c   :  { %v1626_v35 = vpop.f32.mrf.mxu0 }
 0xd76   :  { %v1691_v36 = vpop.eup %1690 }
 0xd77   :  { %v1070_v37 = vpack.c.bf16 %v1691_v36, %v1691_v36 }
 0xd79   :  { %1071 = vst [vmem:[#allocation10 + $0x3c] sm:$0xf] %v1070_v37  ;;  %1072 = vst [vmem:[#allocation3] sm:$0xf] %v1070_v37 }
 0xd7a   :  { %1763 = shalt.err (!%p1760_p5)
}
 0xd7b   :  { %1084 = dma.vmem_to_hbm [thread:$0]  %s1079_s2, 1024, %s2180_s3, [#allocation6], %s1780_s17, %s1780_s17, %s1781_s18  }
 0xd7c   :  { %1776 = dma.done.wait [#allocation6], 1024  }
 0xd7d   :  { %1777 = vsyncadd [#allocation6], 4294966272 }
 0xd7e   :  { %1088 = vsyncpa [#allocation5], 1 }
 0xd7f   :  { %1089 = vsyncpa [#allocation8], 1 }
 0xd80   :  { %1090 = vsyncpa [#allocation6], 1 }

</bundles_post_ra>
